<compile_context>
chip_gen: v6e
topology: v6e:2x2x1
jax: 0.10.0
libtpu: 0.0.40
codegen_flags: <defaults>
</compile_context>

<pallas_src>
import jax
import jax.numpy as jnp
from jax import lax
from jax.experimental import pallas as pl
from jax.experimental.pallas import tpu as pltpu


# -----------------------------------------------------------------------------
# Config (mirrors the PyTorch config dict)
# -----------------------------------------------------------------------------
CONFIG = {
    "num_embedding": 64,                             # V
    "embedding_dim": 16,                             # D
    "feature_col": ["feat_a", "feat_b", "feat_c"],   # F = 3
}
BATCH = 8        # B
SEQ_LEN = 8      # L (ids per feature, summed over)
HIDDEN1 = 512
HIDDEN2 = 128

# Packed small-parameter row layout (lane offsets in the [1, SMALL_PAD] array):
#   [0               : HIDDEN1          )  b1   (512)
#   [HIDDEN1         : HIDDEN1+HIDDEN2  )  b2   (128)
#   [HIDDEN1+HIDDEN2 : HIDDEN1+2*HIDDEN2)  w3 row (128)
#   [HIDDEN1+2*HIDDEN2 : +1             )  b3   (1)
_OFF_B2 = HIDDEN1
_OFF_W3 = HIDDEN1 + HIDDEN2
_OFF_B3 = HIDDEN1 + 2 * HIDDEN2
SMALL_LEN = _OFF_B3 + 1                   # 769
SMALL_PAD = 896                           # pad lane width to a multiple of 128


# -----------------------------------------------------------------------------
# Kernel
# -----------------------------------------------------------------------------
def _mymodel_kernel(idx_ref, w1f_ref, w2t_ref, small_ref, out_ref):
    """counts compare-accumulate -> fused (emb@W1) matmul -> fc2 -> VPU fc3."""
    B, FL = idx_ref.shape          # [B, F*L], indices pre-offset by f*V
    FV = w1f_ref.shape[0]          # F*V (fused fc1 contraction dim)

    # Static slices of the packed small-parameter row (single DMA'd input).
    b1 = small_ref[:, 0:HIDDEN1]               # [1, 512]
    b2 = small_ref[:, _OFF_B2:_OFF_W3]         # [1, 128]
    w3r = small_ref[:, _OFF_W3:_OFF_B3]        # [1, 128]
    b3 = small_ref[:, _OFF_B3:_OFF_B3 + 1]     # [1, 1]

    idx = idx_ref[...]             # [B, F*L] int32

    # Single hoisted iota; counts accumulated as 2D compare-adds staying in
    # (sublane=B, lane=F*V) vregs.  FL = F*L = 24 is a small static unroll.
    # f32 accumulation (portable fast path incl. v5e); counts <= L=8 so the
    # single bf16 cast below is exact.
    iota_fv = lax.broadcasted_iota(jnp.int32, (B, FV), 1)
    counts = jnp.zeros((B, FV), jnp.float32)
    for j in range(FL):
        counts = counts + (idx[:, j:j + 1] == iota_fv).astype(jnp.float32)

    # fc1 fused with the embedding matmul: one [B, F*V] @ [F*V, 512] bf16 dot,
    # f32 accumulation on the MXU.
    h1 = jnp.dot(counts.astype(jnp.bfloat16), w1f_ref[...],
                 preferred_element_type=jnp.float32) + b1
    h1 = jnp.maximum(h1, 0.0)

    h2 = jnp.dot(h1.astype(jnp.bfloat16), w2t_ref[...],
                 preferred_element_type=jnp.float32) + b2
    h2 = jnp.maximum(h2, 0.0)

    # fc3 (N=1): VPU multiply + lane reduction (no degenerate MXU push), then
    # a lane-dense [1, B] store (avoids 1-lane masked partial stores).
    out_vec = jnp.sum(h2 * w3r, axis=-1)        # [B]
    out_ref[...] = out_vec[None, :] + b3        # [1, B]


@jax.jit
def mymodel_forward(idx_flat, w1f, w2t, small):
    B = idx_flat.shape[0]
    out_row = pl.pallas_call(
        _mymodel_kernel,
        out_shape=jax.ShapeDtypeStruct((1, B), jnp.float32),
        # Single invocation, no grid: at B=8 every operand (< 0.5 MB total) is a
        # full-array VMEM block and the kernel is launch/DMA-overhead bound, so
        # the win is minimizing DMAs (4 inputs) and keeping stores lane-dense.
        # Scale-out plan: batch grid with M-tile 128 (v5e) / 256 (v6e, v7x),
        # constant-index weight BlockSpecs (lambda i: (0, 0)) to keep w1f/w2t
        # VMEM-resident across grid steps, dimension_semantics=("parallel",)
        # for both v7x TCs, and a K-tiled "arbitrary" axis over F*V with an f32
        # acc scratch if w1f ever approaches v7x's 64 MiB VMEM.
        in_specs=[pl.BlockSpec(memory_space=pltpu.MemorySpace.VMEM)] * 4,
        out_specs=pl.BlockSpec(memory_space=pltpu.MemorySpace.VMEM),
    )(idx_flat, w1f, w2t, small)
    return out_row.reshape(B, 1)


# -----------------------------------------------------------------------------
# Parameters
# -----------------------------------------------------------------------------
def init_params(key, config):
    """Raw (PyTorch-layout, f32) parameters of the module."""
    V = config["num_embedding"]
    D = config["embedding_dim"]
    F_ = len(config["feature_col"])
    in_dim = D * F_

    k_emb, k1, k2, k3, kb1, kb2, kb3 = jax.random.split(key, 7)

    emb = jax.random.normal(k_emb, (V, D), jnp.float32) * 0.1
    emb = emb.at[0].set(0.0)  # padding_idx=0 (PyTorch zeroes this row at init)

    def linear(kw, kb, fan_in, fan_out):
        bound = 1.0 / jnp.sqrt(fan_in)
        w = jax.random.uniform(kw, (fan_out, fan_in), jnp.float32, -bound, bound)
        b = jax.random.uniform(kb, (fan_out,), jnp.float32, -bound, bound)
        return w, b

    w1, b1 = linear(k1, kb1, in_dim, HIDDEN1)
    w2, b2 = linear(k2, kb2, HIDDEN1, HIDDEN2)
    w3, b3 = linear(k3, kb3, HIDDEN2, 1)
    return dict(emb=emb, w1=w1, b1=b1, w2=w2, b2=b2, w3=w3, b3=b3)


def prepare_kernel_params(raw, config):
    """Fold embedding into fc1, transpose to [in,out], cast big weights to bf16,
    and pack the small f32 params into one lane-dense [1, SMALL_PAD] row."""
    V = config["num_embedding"]
    D = config["embedding_dim"]
    F_ = len(config["feature_col"])

    emb = raw["emb"]            # [V, D]; fold uses it as stored, so the kernel
                                # matches nn.Embedding forward exactly even if a
                                # checkpoint has a nonzero row 0.
    w1t = raw["w1"].T           # [F*D, 512]
    w1f = jnp.concatenate(
        [emb @ w1t[f * D:(f + 1) * D, :] for f in range(F_)], axis=0)  # [F*V, 512]

    small = jnp.zeros((1, SMALL_PAD), jnp.float32)
    small = small.at[0, 0:HIDDEN1].set(raw["b1"])
    small = small.at[0, _OFF_B2:_OFF_W3].set(raw["b2"])
    small = small.at[0, _OFF_W3:_OFF_B3].set(raw["w3"].reshape(HIDDEN2))
    small = small.at[0, _OFF_B3].set(raw["b3"][0])

    return dict(
        w1f=w1f.astype(jnp.bfloat16),            # fused fc1 weight  [F*V, 512]
        w2t=raw["w2"].T.astype(jnp.bfloat16),    # [512, 128]
        small=small,                             # packed b1|b2|w3|b3  [1, 896]
    )


def run_model(features_dict, kparams, config):
    V = config["num_embedding"]
    F_ = len(config["feature_col"])
    # Stack per-feature indices batch-major [B, F, L] and offset feature f by f*V
    # so the in-kernel counts land directly in [B, F*V] lane order (glue only).
    idx = jnp.stack(
        [features_dict[ff].astype(jnp.int32) for ff in config["feature_col"]],
        axis=1)                                                     # [B, F, L]
    idx = idx + (jnp.arange(F_, dtype=jnp.int32) * V)[None, :, None]
    idx_flat = idx.reshape(idx.shape[0], -1)                        # [B, F*L]
    return mymodel_forward(idx_flat, kparams["w1f"], kparams["w2t"],
                           kparams["small"])


def reference_forward(features_dict, raw, config):
    """Pure-JAX f32 reference mirroring the PyTorch forward."""
    emb = raw["emb"]
    cols = [jnp.sum(emb[features_dict[ff]], axis=1)
            for ff in config["feature_col"]]
    x = jnp.concatenate(cols, axis=1)
    x = jnp.maximum(x @ raw["w1"].T + raw["b1"], 0.0)
    x = jnp.maximum(x @ raw["w2"].T + raw["b2"], 0.0)
    return x @ raw["w3"].T + raw["b3"]


if __name__ == "__main__":
    key = jax.random.PRNGKey(0)
    k_params, k_feat = jax.random.split(key)

    raw_params = init_params(k_params, CONFIG)
    kernel_params = prepare_kernel_params(raw_params, CONFIG)

    # Deterministic synthetic inputs: one [B, L] int index tensor per feature.
    features = {}
    fkeys = jax.random.split(k_feat, len(CONFIG["feature_col"]))
    for ff, fk in zip(CONFIG["feature_col"], fkeys):
        features[ff] = jax.random.randint(
            fk, (BATCH, SEQ_LEN), 0, CONFIG["num_embedding"], dtype=jnp.int32)

    out = run_model(features, kernel_params, CONFIG)
    out = jax.block_until_ready(out)

    ref = reference_forward(features, raw_params, CONFIG)
    assert out.shape == (BATCH, 1), out.shape
    # bf16 weight storage introduces ~1e-3-level absolute differences vs the
    # pure-f32 reference; the structural fold alone is exact up to f32 reorder.
    assert jnp.allclose(out, ref, atol=1e-2, rtol=1e-2), (out, ref)

    print("KERNEL_OK")
</pallas_src>

<mosaic_0001>
module attributes {stable_mosaic.version = 11 : i64} {
  func.func @_mymodel_kernel(%arg0: memref<8x24xi32, #tpu.memory_space<vmem>>, %arg1: memref<192x512xbf16, #tpu.memory_space<vmem>>, %arg2: memref<512x128xbf16, #tpu.memory_space<vmem>>, %arg3: memref<1x896xf32, #tpu.memory_space<vmem>>, %arg4: memref<1x8xf32, #tpu.memory_space<vmem>>) attributes {dimension_semantics = [], scalar_prefetch = 0 : i64, scratch_operands = 0 : i64, tpu.core_type = #tpu.core_type<tc>} {
    %c0 = arith.constant 0 : index
    %c0_0 = arith.constant 0 : index
    %0 = vector.load %arg3[%c0, %c0_0] : memref<1x896xf32, #tpu.memory_space<vmem>>, vector<1x512xf32>
    %c0_1 = arith.constant 0 : index
    %c512 = arith.constant 512 : index
    %1 = vector.load %arg3[%c0_1, %c512] : memref<1x896xf32, #tpu.memory_space<vmem>>, vector<1x128xf32>
    %c0_2 = arith.constant 0 : index
    %c640 = arith.constant 640 : index
    %2 = vector.load %arg3[%c0_2, %c640] : memref<1x896xf32, #tpu.memory_space<vmem>>, vector<1x128xf32>
    %c0_3 = arith.constant 0 : index
    %c768 = arith.constant 768 : index
    %3 = vector.load %arg3[%c0_3, %c768] : memref<1x896xf32, #tpu.memory_space<vmem>>, vector<1x1xf32>
    %c0_4 = arith.constant 0 : index
    %c0_5 = arith.constant 0 : index
    %4 = vector.load %arg0[%c0_4, %c0_5] : memref<8x24xi32, #tpu.memory_space<vmem>>, vector<8x24xi32>
    %5 = tpu.iota {dimensions = array<i32: 1>} : vector<8x192xi32>
    %cst = arith.constant 0.000000e+00 : f32
    %6 = vector.broadcast %cst : f32 to vector<8x192xf32>
    %7 = vector.extract_strided_slice %4 {offsets = [0, 0], sizes = [8, 1], strides = [1, 1]} : vector<8x24xi32> to vector<8x1xi32>
    %8 = vector.broadcast %7 : vector<8x1xi32> to vector<8x192xi32>
    %9 = arith.cmpi eq, %8, %5 : vector<8x192xi32>
    %10 = arith.extui %9 : vector<8x192xi1> to vector<8x192xi32>
    %11 = arith.sitofp %10 : vector<8x192xi32> to vector<8x192xf32>
    %12 = arith.addf %6, %11 : vector<8x192xf32>
    %13 = vector.extract_strided_slice %4 {offsets = [0, 1], sizes = [8, 1], strides = [1, 1]} : vector<8x24xi32> to vector<8x1xi32>
    %14 = vector.broadcast %13 : vector<8x1xi32> to vector<8x192xi32>
    %15 = arith.cmpi eq, %14, %5 : vector<8x192xi32>
    %16 = arith.extui %15 : vector<8x192xi1> to vector<8x192xi32>
    %17 = arith.sitofp %16 : vector<8x192xi32> to vector<8x192xf32>
    %18 = arith.addf %12, %17 : vector<8x192xf32>
    %19 = vector.extract_strided_slice %4 {offsets = [0, 2], sizes = [8, 1], strides = [1, 1]} : vector<8x24xi32> to vector<8x1xi32>
    %20 = vector.broadcast %19 : vector<8x1xi32> to vector<8x192xi32>
    %21 = arith.cmpi eq, %20, %5 : vector<8x192xi32>
    %22 = arith.extui %21 : vector<8x192xi1> to vector<8x192xi32>
    %23 = arith.sitofp %22 : vector<8x192xi32> to vector<8x192xf32>
    %24 = arith.addf %18, %23 : vector<8x192xf32>
    %25 = vector.extract_strided_slice %4 {offsets = [0, 3], sizes = [8, 1], strides = [1, 1]} : vector<8x24xi32> to vector<8x1xi32>
    %26 = vector.broadcast %25 : vector<8x1xi32> to vector<8x192xi32>
    %27 = arith.cmpi eq, %26, %5 : vector<8x192xi32>
    %28 = arith.extui %27 : vector<8x192xi1> to vector<8x192xi32>
    %29 = arith.sitofp %28 : vector<8x192xi32> to vector<8x192xf32>
    %30 = arith.addf %24, %29 : vector<8x192xf32>
    %31 = vector.extract_strided_slice %4 {offsets = [0, 4], sizes = [8, 1], strides = [1, 1]} : vector<8x24xi32> to vector<8x1xi32>
    %32 = vector.broadcast %31 : vector<8x1xi32> to vector<8x192xi32>
    %33 = arith.cmpi eq, %32, %5 : vector<8x192xi32>
    %34 = arith.extui %33 : vector<8x192xi1> to vector<8x192xi32>
    %35 = arith.sitofp %34 : vector<8x192xi32> to vector<8x192xf32>
    %36 = arith.addf %30, %35 : vector<8x192xf32>
    %37 = vector.extract_strided_slice %4 {offsets = [0, 5], sizes = [8, 1], strides = [1, 1]} : vector<8x24xi32> to vector<8x1xi32>
    %38 = vector.broadcast %37 : vector<8x1xi32> to vector<8x192xi32>
    %39 = arith.cmpi eq, %38, %5 : vector<8x192xi32>
    %40 = arith.extui %39 : vector<8x192xi1> to vector<8x192xi32>
    %41 = arith.sitofp %40 : vector<8x192xi32> to vector<8x192xf32>
    %42 = arith.addf %36, %41 : vector<8x192xf32>
    %43 = vector.extract_strided_slice %4 {offsets = [0, 6], sizes = [8, 1], strides = [1, 1]} : vector<8x24xi32> to vector<8x1xi32>
    %44 = vector.broadcast %43 : vector<8x1xi32> to vector<8x192xi32>
    %45 = arith.cmpi eq, %44, %5 : vector<8x192xi32>
    %46 = arith.extui %45 : vector<8x192xi1> to vector<8x192xi32>
    %47 = arith.sitofp %46 : vector<8x192xi32> to vector<8x192xf32>
    %48 = arith.addf %42, %47 : vector<8x192xf32>
    %49 = vector.extract_strided_slice %4 {offsets = [0, 7], sizes = [8, 1], strides = [1, 1]} : vector<8x24xi32> to vector<8x1xi32>
    %50 = vector.broadcast %49 : vector<8x1xi32> to vector<8x192xi32>
    %51 = arith.cmpi eq, %50, %5 : vector<8x192xi32>
    %52 = arith.extui %51 : vector<8x192xi1> to vector<8x192xi32>
    %53 = arith.sitofp %52 : vector<8x192xi32> to vector<8x192xf32>
    %54 = arith.addf %48, %53 : vector<8x192xf32>
    %55 = vector.extract_strided_slice %4 {offsets = [0, 8], sizes = [8, 1], strides = [1, 1]} : vector<8x24xi32> to vector<8x1xi32>
    %56 = vector.broadcast %55 : vector<8x1xi32> to vector<8x192xi32>
    %57 = arith.cmpi eq, %56, %5 : vector<8x192xi32>
    %58 = arith.extui %57 : vector<8x192xi1> to vector<8x192xi32>
    %59 = arith.sitofp %58 : vector<8x192xi32> to vector<8x192xf32>
    %60 = arith.addf %54, %59 : vector<8x192xf32>
    %61 = vector.extract_strided_slice %4 {offsets = [0, 9], sizes = [8, 1], strides = [1, 1]} : vector<8x24xi32> to vector<8x1xi32>
    %62 = vector.broadcast %61 : vector<8x1xi32> to vector<8x192xi32>
    %63 = arith.cmpi eq, %62, %5 : vector<8x192xi32>
    %64 = arith.extui %63 : vector<8x192xi1> to vector<8x192xi32>
    %65 = arith.sitofp %64 : vector<8x192xi32> to vector<8x192xf32>
    %66 = arith.addf %60, %65 : vector<8x192xf32>
    %67 = vector.extract_strided_slice %4 {offsets = [0, 10], sizes = [8, 1], strides = [1, 1]} : vector<8x24xi32> to vector<8x1xi32>
    %68 = vector.broadcast %67 : vector<8x1xi32> to vector<8x192xi32>
    %69 = arith.cmpi eq, %68, %5 : vector<8x192xi32>
    %70 = arith.extui %69 : vector<8x192xi1> to vector<8x192xi32>
    %71 = arith.sitofp %70 : vector<8x192xi32> to vector<8x192xf32>
    %72 = arith.addf %66, %71 : vector<8x192xf32>
    %73 = vector.extract_strided_slice %4 {offsets = [0, 11], sizes = [8, 1], strides = [1, 1]} : vector<8x24xi32> to vector<8x1xi32>
    %74 = vector.broadcast %73 : vector<8x1xi32> to vector<8x192xi32>
    %75 = arith.cmpi eq, %74, %5 : vector<8x192xi32>
    %76 = arith.extui %75 : vector<8x192xi1> to vector<8x192xi32>
    %77 = arith.sitofp %76 : vector<8x192xi32> to vector<8x192xf32>
    %78 = arith.addf %72, %77 : vector<8x192xf32>
    %79 = vector.extract_strided_slice %4 {offsets = [0, 12], sizes = [8, 1], strides = [1, 1]} : vector<8x24xi32> to vector<8x1xi32>
    %80 = vector.broadcast %79 : vector<8x1xi32> to vector<8x192xi32>
    %81 = arith.cmpi eq, %80, %5 : vector<8x192xi32>
    %82 = arith.extui %81 : vector<8x192xi1> to vector<8x192xi32>
    %83 = arith.sitofp %82 : vector<8x192xi32> to vector<8x192xf32>
    %84 = arith.addf %78, %83 : vector<8x192xf32>
    %85 = vector.extract_strided_slice %4 {offsets = [0, 13], sizes = [8, 1], strides = [1, 1]} : vector<8x24xi32> to vector<8x1xi32>
    %86 = vector.broadcast %85 : vector<8x1xi32> to vector<8x192xi32>
    %87 = arith.cmpi eq, %86, %5 : vector<8x192xi32>
    %88 = arith.extui %87 : vector<8x192xi1> to vector<8x192xi32>
    %89 = arith.sitofp %88 : vector<8x192xi32> to vector<8x192xf32>
    %90 = arith.addf %84, %89 : vector<8x192xf32>
    %91 = vector.extract_strided_slice %4 {offsets = [0, 14], sizes = [8, 1], strides = [1, 1]} : vector<8x24xi32> to vector<8x1xi32>
    %92 = vector.broadcast %91 : vector<8x1xi32> to vector<8x192xi32>
    %93 = arith.cmpi eq, %92, %5 : vector<8x192xi32>
    %94 = arith.extui %93 : vector<8x192xi1> to vector<8x192xi32>
    %95 = arith.sitofp %94 : vector<8x192xi32> to vector<8x192xf32>
    %96 = arith.addf %90, %95 : vector<8x192xf32>
    %97 = vector.extract_strided_slice %4 {offsets = [0, 15], sizes = [8, 1], strides = [1, 1]} : vector<8x24xi32> to vector<8x1xi32>
    %98 = vector.broadcast %97 : vector<8x1xi32> to vector<8x192xi32>
    %99 = arith.cmpi eq, %98, %5 : vector<8x192xi32>
    %100 = arith.extui %99 : vector<8x192xi1> to vector<8x192xi32>
    %101 = arith.sitofp %100 : vector<8x192xi32> to vector<8x192xf32>
    %102 = arith.addf %96, %101 : vector<8x192xf32>
    %103 = vector.extract_strided_slice %4 {offsets = [0, 16], sizes = [8, 1], strides = [1, 1]} : vector<8x24xi32> to vector<8x1xi32>
    %104 = vector.broadcast %103 : vector<8x1xi32> to vector<8x192xi32>
    %105 = arith.cmpi eq, %104, %5 : vector<8x192xi32>
    %106 = arith.extui %105 : vector<8x192xi1> to vector<8x192xi32>
    %107 = arith.sitofp %106 : vector<8x192xi32> to vector<8x192xf32>
    %108 = arith.addf %102, %107 : vector<8x192xf32>
    %109 = vector.extract_strided_slice %4 {offsets = [0, 17], sizes = [8, 1], strides = [1, 1]} : vector<8x24xi32> to vector<8x1xi32>
    %110 = vector.broadcast %109 : vector<8x1xi32> to vector<8x192xi32>
    %111 = arith.cmpi eq, %110, %5 : vector<8x192xi32>
    %112 = arith.extui %111 : vector<8x192xi1> to vector<8x192xi32>
    %113 = arith.sitofp %112 : vector<8x192xi32> to vector<8x192xf32>
    %114 = arith.addf %108, %113 : vector<8x192xf32>
    %115 = vector.extract_strided_slice %4 {offsets = [0, 18], sizes = [8, 1], strides = [1, 1]} : vector<8x24xi32> to vector<8x1xi32>
    %116 = vector.broadcast %115 : vector<8x1xi32> to vector<8x192xi32>
    %117 = arith.cmpi eq, %116, %5 : vector<8x192xi32>
    %118 = arith.extui %117 : vector<8x192xi1> to vector<8x192xi32>
    %119 = arith.sitofp %118 : vector<8x192xi32> to vector<8x192xf32>
    %120 = arith.addf %114, %119 : vector<8x192xf32>
    %121 = vector.extract_strided_slice %4 {offsets = [0, 19], sizes = [8, 1], strides = [1, 1]} : vector<8x24xi32> to vector<8x1xi32>
    %122 = vector.broadcast %121 : vector<8x1xi32> to vector<8x192xi32>
    %123 = arith.cmpi eq, %122, %5 : vector<8x192xi32>
    %124 = arith.extui %123 : vector<8x192xi1> to vector<8x192xi32>
    %125 = arith.sitofp %124 : vector<8x192xi32> to vector<8x192xf32>
    %126 = arith.addf %120, %125 : vector<8x192xf32>
    %127 = vector.extract_strided_slice %4 {offsets = [0, 20], sizes = [8, 1], strides = [1, 1]} : vector<8x24xi32> to vector<8x1xi32>
    %128 = vector.broadcast %127 : vector<8x1xi32> to vector<8x192xi32>
    %129 = arith.cmpi eq, %128, %5 : vector<8x192xi32>
    %130 = arith.extui %129 : vector<8x192xi1> to vector<8x192xi32>
    %131 = arith.sitofp %130 : vector<8x192xi32> to vector<8x192xf32>
    %132 = arith.addf %126, %131 : vector<8x192xf32>
    %133 = vector.extract_strided_slice %4 {offsets = [0, 21], sizes = [8, 1], strides = [1, 1]} : vector<8x24xi32> to vector<8x1xi32>
    %134 = vector.broadcast %133 : vector<8x1xi32> to vector<8x192xi32>
    %135 = arith.cmpi eq, %134, %5 : vector<8x192xi32>
    %136 = arith.extui %135 : vector<8x192xi1> to vector<8x192xi32>
    %137 = arith.sitofp %136 : vector<8x192xi32> to vector<8x192xf32>
    %138 = arith.addf %132, %137 : vector<8x192xf32>
    %139 = vector.extract_strided_slice %4 {offsets = [0, 22], sizes = [8, 1], strides = [1, 1]} : vector<8x24xi32> to vector<8x1xi32>
    %140 = vector.broadcast %139 : vector<8x1xi32> to vector<8x192xi32>
    %141 = arith.cmpi eq, %140, %5 : vector<8x192xi32>
    %142 = arith.extui %141 : vector<8x192xi1> to vector<8x192xi32>
    %143 = arith.sitofp %142 : vector<8x192xi32> to vector<8x192xf32>
    %144 = arith.addf %138, %143 : vector<8x192xf32>
    %145 = vector.extract_strided_slice %4 {offsets = [0, 23], sizes = [8, 1], strides = [1, 1]} : vector<8x24xi32> to vector<8x1xi32>
    %146 = vector.broadcast %145 : vector<8x1xi32> to vector<8x192xi32>
    %147 = arith.cmpi eq, %146, %5 : vector<8x192xi32>
    %148 = arith.extui %147 : vector<8x192xi1> to vector<8x192xi32>
    %149 = arith.sitofp %148 : vector<8x192xi32> to vector<8x192xf32>
    %150 = arith.addf %144, %149 : vector<8x192xf32>
    %151 = arith.truncf %150 : vector<8x192xf32> to vector<8x192xbf16>
    %c0_6 = arith.constant 0 : index
    %c0_7 = arith.constant 0 : index
    %152 = vector.load %arg1[%c0_6, %c0_7] : memref<192x512xbf16, #tpu.memory_space<vmem>>, vector<192x512xbf16>
    %cst_8 = arith.constant dense<0.000000e+00> : vector<8x512xf32>
    %153 = tpu.matmul %151, %152, %cst_8 {dimension_numbers = #tpu.dot_dimension_numbers<[1], [0], [0], [1], [0, 0, 1, 1], [], []>} : vector<8x192xbf16>, vector<192x512xbf16>, vector<8x512xf32> -> vector<8x512xf32>
    %154 = vector.broadcast %0 : vector<1x512xf32> to vector<8x512xf32>
    %155 = arith.addf %153, %154 : vector<8x512xf32>
    %cst_9 = arith.constant 0.000000e+00 : f32
    %156 = vector.broadcast %cst_9 : f32 to vector<8x512xf32>
    %157 = arith.maximumf %155, %156 : vector<8x512xf32>
    %158 = arith.truncf %157 : vector<8x512xf32> to vector<8x512xbf16>
    %c0_10 = arith.constant 0 : index
    %c0_11 = arith.constant 0 : index
    %159 = vector.load %arg2[%c0_10, %c0_11] : memref<512x128xbf16, #tpu.memory_space<vmem>>, vector<512x128xbf16>
    %cst_12 = arith.constant dense<0.000000e+00> : vector<8x128xf32>
    %160 = tpu.matmul %158, %159, %cst_12 {dimension_numbers = #tpu.dot_dimension_numbers<[1], [0], [0], [1], [0, 0, 1, 1], [], []>} : vector<8x512xbf16>, vector<512x128xbf16>, vector<8x128xf32> -> vector<8x128xf32>
    %161 = vector.broadcast %1 : vector<1x128xf32> to vector<8x128xf32>
    %162 = arith.addf %160, %161 : vector<8x128xf32>
    %cst_13 = arith.constant 0.000000e+00 : f32
    %163 = vector.broadcast %cst_13 : f32 to vector<8x128xf32>
    %164 = arith.maximumf %162, %163 : vector<8x128xf32>
    %165 = vector.broadcast %2 : vector<1x128xf32> to vector<8x128xf32>
    %166 = arith.mulf %164, %165 : vector<8x128xf32>
    %cst_14 = arith.constant dense<0.000000e+00> : vector<8xf32>
    %167 = vector.multi_reduction <add>, %166, %cst_14 [1] : vector<8x128xf32> to vector<8xf32>
    %168 = vector.shape_cast %167 : vector<8xf32> to vector<1x8xf32>
    %169 = vector.broadcast %3 : vector<1x1xf32> to vector<1x8xf32>
    %170 = arith.addf %168, %169 : vector<1x8xf32>
    %c0_15 = arith.constant 0 : index
    %c0_16 = arith.constant 0 : index
    %171 = vector.load %arg4[%c0_15, %c0_16] : memref<1x8xf32, #tpu.memory_space<vmem>>, vector<1x8xf32>
    tpu.vector_store %arg4[%c0_15, %c0_16], %170 {strides = array<i32>} : memref<1x8xf32, #tpu.memory_space<vmem>>, vector<1x8xf32>,
    return
  }
}

</mosaic_0001>

<bundles_post_ra>
// kernel: mymodel_forward.1
= control target key start
LH: loop header
LB: loop body
LE: loop exit
PB: predicated region body
PF: predicated region fallthrough
CT: control target
= control target key end

     0   :  { %9 = vsyncpa [#allocation3], 0  ;;  %s1787_s0 = inlined_call_operand.hbm [shape: s32[8,24], index: 0, kind: input, shape index: {}]   ;;  %s1788_s1 = inlined_call_operand.hbm [shape: bf16[192,512], index: 1, kind: input, shape index: {}]   ;;  %s1789_s2 = inlined_call_operand.hbm [shape: bf16[512,128], index: 2, kind: input, shape index: {}]   ;;  %s1790_s3 = inlined_call_operand.hbm [shape: f32[1,896], index: 3, kind: input, shape index: {}]   ;;  %s1791_s4 = inlined_call_operand.hbm [shape: f32[1,8], index: 4, kind: output, shape index: {}]  }
   0x1   :  { %10 = vsyncpa [#allocation6], 0 }
   0x2   :  { %11 = vsyncpa [#allocation9], 0 }
   0x3   :  { %12 = vsyncpa [#allocation4], 0  ;;  %s1581_s15 = smov [#allocation5]  }
   0x4   :  { %s28_s16 = sshll.u32 %s1581_s15, 4  ;;  %s29_s16 = int_to_ptr.vmem [resolvable:$true] %s28_s16 }
   0x5   :  { %s1481_s17 = scalar_lea.vmem %s29_s16, 6144  ;;  %p1486_p1 = scmp.lt.s32.totalorder %s29_s16, %s29_s16 }
   0x6   :  { %p1482_p0 = scmp.ne.s32.totalorder %s29_s16, %s1481_s17  ;;  %p1487_p2 = scmp.lt.s32.totalorder %s1481_s17, %s1481_s17 }
   0x8   :  { %p1488_p3 = por %p1487_p2, %p1486_p1 }
   0xa   :  { %p1489_p4 = pnand %p1488_p3, %p1482_p0 }
   0xc   :  { %1492 = shalt.err (!%p1489_p4)
}
   0xd   :  { %s1582_s18 = smov 256   ;;  %s1583_s19 = smov 16  }
   0xe   :  { %34 = dma.hbm_to_vmem [thread:$0]  %s1788_s1, 6144, %s29_s16, [#allocation6], %s1582_s18, %s1582_s18, %s1583_s19  }
   0xf   :  { %s1584_s22 = smov [#allocation2]   ;;  %s1585_s24 = smov [#allocation7]  }
  0x10   :  { %s19_s23 = sshll.u32 %s1584_s22, 4  ;;  %s40_s25 = sshll.u32 %s1585_s24, 4  ;;  %s20_s23 = int_to_ptr.vmem [resolvable:$true] %s19_s23  ;;  %s41_s25 = int_to_ptr.vmem [resolvable:$true] %s40_s25 }
  0x11   :  { %s1501_s26 = scalar_lea.vmem %s20_s23, 128  ;;  %p1506_p6 = scmp.lt.s32.totalorder %s20_s23, %s20_s23 }
  0x12   :  { %p1502_p5 = scmp.ne.s32.totalorder %s20_s23, %s1501_s26  ;;  %p1507_p7 = scmp.lt.s32.totalorder %s1501_s26, %s1501_s26 }
  0x14   :  { %p1508_p8 = por %p1507_p7, %p1506_p6 }
  0x16   :  { %p1509_p9 = pnand %p1508_p8, %p1502_p5 }
  0x18   :  { %1512 = shalt.err (!%p1509_p9)
}
  0x19   :  { %22 = dma.hbm_to_vmem [thread:$0]  %s1787_s0, 128, %s20_s23, [#allocation3]  }
  0x1a   :  { %s1521_s29 = scalar_lea.vmem %s41_s25, 4096  ;;  %p1526_p11 = scmp.lt.s32.totalorder %s41_s25, %s41_s25 }
  0x1b   :  { %p1522_p10 = scmp.ne.s32.totalorder %s41_s25, %s1521_s29  ;;  %p1527_p12 = scmp.lt.s32.totalorder %s1521_s29, %s1521_s29 }
  0x1d   :  { %p1528_p13 = por %p1527_p12, %p1526_p11 }
  0x1f   :  { %p1529_p0 = pnand %p1528_p13, %p1522_p10 }
  0x21   :  { %1532 = shalt.err (!%p1529_p0)
}
  0x22   :  { %s1586_s1 = smov 64   ;;  %s1587_s30 = smov 4  }
  0x23   :  { %46 = dma.hbm_to_vmem [thread:$0]  %s1789_s2, 4096, %s41_s25, [#allocation6], %s1586_s1, %s1586_s1, %s1587_s30  }
  0x24   :  { %s1588_s7 = smov [#allocation8]  }
  0x25   :  { %s53_s8 = sshll.u32 %s1588_s7, 4  ;;  %s54_s8 = int_to_ptr.vmem [resolvable:$true] %s53_s8 }
  0x26   :  { %s1541_s9 = scalar_lea.vmem %s54_s8, 112  ;;  %s1545_s0 = scalar_lea.vmem %s54_s8, 128 }
  0x27   :  { %p1542_p1 = scmp.ne.s32.totalorder %s54_s8, %s1541_s9  ;;  %p1546_p2 = scmp.lt.s32.totalorder %s54_s8, %s54_s8 }
  0x28   :  { %p1547_p3 = scmp.lt.s32.totalorder %s1545_s0, %s1541_s9 }
  0x2a   :  { %p1548_p4 = por %p1547_p3, %p1546_p2 }
  0x2c   :  { %p1549_p5 = pnand %p1548_p4, %p1542_p1 }
  0x2e   :  { %1552 = shalt.err (!%p1549_p5)
}
  0x2f   :  { %56 = dma.hbm_to_vmem [thread:$0]  %s1790_s3, 112, %s54_s8, [#allocation9]  }
  0x30   :  { %1573 = dma.done.wait [#allocation3], 128  }
  0x31   :  { %1574 = vsyncadd [#allocation3], 4294967168 }
  0x32   :  { %1575 = dma.done.wait [#allocation6], 10240  }
  0x33   :  { %1576 = vsyncadd [#allocation6], 4294957056 }
  0x34   :  { %1577 = dma.done.wait [#allocation9], 112  }
  0x35   :  { %1578 = vsyncadd [#allocation9], 4294967184  ;;  %v1589_v0 = vmov 2   ;;  %v1590_v1 = vmov 0   ;;  %v1653_v2 = vld [vmem:[#allocation2] sm:$0xff]  ;;  %v1591_v3 = vmov 3  }
  0x36   :  { %1346 = vset.pattern.permute.xlu1 %v1589_v0  ;;  %1344 = vset.pattern.permute.xlu0 %v1590_v1  ;;  %v1592_v4 = vmov 1   ;;  %v1593_v5 = vmov 4   ;;  %v1594_v6 = vmov 5   ;;  %v1595_v7 = vmov 6   ;;  %v1369_v13 = vld [vmem:[#allocation5 + $0xe4] ss:$16 sps:$4 sm:$0xff]  }
  0x37   :  { %101 = vperm.xlu1 %1346, %v1653_v2   ;;  %79 = vperm.xlu0 %1344, %v1653_v2   ;;  %v1596_v8 = vmov 8   ;;  %v1597_v9 = vmov 7   ;;  %v1598_v10 = vmov 11   ;;  %v1599_v11 = vmov 9   ;;  %v1371_v14 = vld [vmem:[#allocation5 + $0xec] ss:$16 sps:$4 sm:$0xff]  }
  0x38   :  { %v1600_v12 = vmov 14   ;;  %v1373_v15 = vld [vmem:[#allocation5 + $0xe0] ss:$16 sps:$4 sm:$0xff]   ;;  %v1374_v16 = vld [vmem:[#allocation5 + $0xe8] ss:$16 sps:$4 sm:$0xff]   ;;  %657 = vmatprep.subr.bf16.mxu0 %v1369_v13  ;;  %698 = vmatprep.subr.bf16.mxu1 %v1371_v14  ;;  %v1601_v17 = vmov 10  }
  0x39   :  { %658 = vmatpush1.bf16.msra.mxu0 %v1373_v15  ;;  %699 = vmatpush1.bf16.msra.mxu1 %v1374_v16  ;;  %v1602_v18 = vmov 17   ;;  %v1375_v19 = vld [vmem:[#allocation5 + $0xc4] ss:$16 sps:$4 sm:$0xff]   ;;  %v1377_v20 = vld [vmem:[#allocation5 + $0xcc] ss:$16 sps:$4 sm:$0xff]   ;;  %v1603_v25 = vmov 12  }
  0x3a   :  { %v1379_v21 = vld [vmem:[#allocation5 + $0xc0] ss:$16 sps:$4 sm:$0xff]   ;;  %v1380_v22 = vld [vmem:[#allocation5 + $0xc8] ss:$16 sps:$4 sm:$0xff]   ;;  %659 = vmatprep.subr.bf16.mxu0 %v1375_v19  ;;  %700 = vmatprep.subr.bf16.mxu1 %v1377_v20  ;;  %v1381_v23 = vld [vmem:[#allocation5 + $0xa4] ss:$16 sps:$4 sm:$0xff]  }
  0x3b   :  { %1347 = vset.pattern.permute.xlu1 %v1591_v3  ;;  %1345 = vset.pattern.permute.xlu0 %v1592_v4  ;;  %v1383_v24 = vld [vmem:[#allocation5 + $0xac] ss:$16 sps:$4 sm:$0xff]   ;;  %v1604_v26 = vmov 20   ;;  %v1385_v27 = vld [vmem:[#allocation5 + $0xa0] ss:$16 sps:$4 sm:$0xff]   ;;  %v1605_v33 = vmov 13  }
  0x3c   :  { %112 = vperm.xlu1 %1347, %v1653_v2   ;;  %90 = vperm.xlu0 %1345, %v1653_v2   ;;  %v1386_v28 = vld [vmem:[#allocation5 + $0xa8] ss:$16 sps:$4 sm:$0xff]   ;;  %v1387_v29 = vld [vmem:[#allocation5 + $0x84] ss:$16 sps:$4 sm:$0xff]   ;;  %v1389_v30 = vld [vmem:[#allocation5 + $0x8c] ss:$16 sps:$4 sm:$0xff]  }
  0x3d   :  { %660 = vmatpush1.bf16.msra.mxu0 %v1379_v21  ;;  %701 = vmatpush1.bf16.msra.mxu1 %v1380_v22  ;;  %v1391_v31 = vld [vmem:[#allocation5 + $0x80] ss:$16 sps:$4 sm:$0xff]   ;;  %v1392_v32 = vld [vmem:[#allocation5 + $0x88] ss:$16 sps:$4 sm:$0xff]   ;;  %v1606_v34 = vmov 23   ;;  %v1607_v39 = vmov 15  }
  0x3e   :  { %661 = vmatprep.subr.bf16.mxu0 %v1381_v23  ;;  %702 = vmatprep.subr.bf16.mxu1 %v1383_v24  ;;  %v1393_v35 = vld [vmem:[#allocation5 + $0x64] ss:$16 sps:$4 sm:$0xff]   ;;  %v1395_v36 = vld [vmem:[#allocation5 + $0x6c] ss:$16 sps:$4 sm:$0xff]   ;;  %v1397_v37 = vld [vmem:[#allocation5 + $0x60] ss:$16 sps:$4 sm:$0xff]  }
  0x3f   :  { %v1398_v38 = vld [vmem:[#allocation5 + $0x68] ss:$16 sps:$4 sm:$0xff]   ;;  %v1399_v40 = vld [vmem:[#allocation5 + $0x44] ss:$16 sps:$4 sm:$0xff]   ;;  %v1401_v41 = vld [vmem:[#allocation5 + $0x4c] ss:$16 sps:$4 sm:$0xff]  }
  0x40   :  { %1348 = vset.pattern.permute.xlu1 %v1593_v5  ;;  %1349 = vset.pattern.permute.xlu0 %v1594_v6  ;;  %v1403_v42 = vld [vmem:[#allocation5 + $0x40] ss:$16 sps:$4 sm:$0xff]   ;;  %v1404_v43 = vld [vmem:[#allocation5 + $0x48] ss:$16 sps:$4 sm:$0xff]   ;;  %v1608_v44 = vmov 16   ;;  %v1609_v51 = vmov 18  }
  0x41   :  { %123 = vperm.xlu1 %1348, %v1653_v2   ;;  %134 = vperm.xlu0 %1349, %v1653_v2   ;;  %v1405_v45 = vld [vmem:[#allocation5 + $0x24] ss:$16 sps:$4 sm:$0xff]   ;;  %v1407_v46 = vld [vmem:[#allocation5 + $0x2c] ss:$16 sps:$4 sm:$0xff]   ;;  %v1409_v47 = vld [vmem:[#allocation5 + $0x20] ss:$16 sps:$4 sm:$0xff]  }
  0x42   :  { %662 = vmatpush1.bf16.msra.mxu0 %v1385_v27  ;;  %703 = vmatpush1.bf16.msra.mxu1 %v1386_v28  ;;  %v1410_v48 = vld [vmem:[#allocation5 + $0x28] ss:$16 sps:$4 sm:$0xff]   ;;  %v1411_v49 = vld [vmem:[#allocation5 + $0x4] ss:$16 sps:$4 sm:$0xff]   ;;  %v1413_v50 = vld [vmem:[#allocation5 + $0xc] ss:$16 sps:$4 sm:$0xff]  }
  0x43   :  { %663 = vmatprep.subr.bf16.mxu0 %v1387_v29  ;;  %704 = vmatprep.subr.bf16.mxu1 %v1389_v30  ;;  %v1415_v52 = vld [vmem:[#allocation5] ss:$16 sps:$4 sm:$0xff]   ;;  %v1416_v53 = vld [vmem:[#allocation5 + $0x8] ss:$16 sps:$4 sm:$0xff]   ;;  %v1417_v54 = vld [vmem:[#allocation5 + $0x164] ss:$16 sps:$4 sm:$0xff]  }
  0x44   :  { %v1419_v55 = vld [vmem:[#allocation5 + $0x16c] ss:$16 sps:$4 sm:$0xff]   ;;  %v1421_v56 = vld [vmem:[#allocation5 + $0x160] ss:$16 sps:$4 sm:$0xff]   ;;  %v1610_v57 = vmov 19   ;;  %v1611_v63 = vmov 21  }
  0x45   :  { %1350 = vset.pattern.permute.xlu1 %v1595_v7  ;;  %1352 = vset.pattern.permute.xlu0 %v1596_v8  ;;  %v1422_v58 = vld [vmem:[#allocation5 + $0x168] ss:$16 sps:$4 sm:$0xff]   ;;  %v1423_v59 = vld [vmem:[#allocation5 + $0x144] ss:$16 sps:$4 sm:$0xff]   ;;  %v1425_v60 = vld [vmem:[#allocation5 + $0x14c] ss:$16 sps:$4 sm:$0xff]  }
  0x46   :  { %145 = vperm.xlu1 %1350, %v1653_v2   ;;  %167 = vperm.xlu0 %1352, %v1653_v2   ;;  %v1427_v61 = vld [vmem:[#allocation5 + $0x140] ss:$16 sps:$4 sm:$0xff]   ;;  %v1428_v62 = vld [vmem:[#allocation5 + $0x148] ss:$16 sps:$4 sm:$0xff]   ;;  %v1429_v0 = vld [vmem:[#allocation5 + $0x124] ss:$16 sps:$4 sm:$0xff]  }
  0x47   :  { %664 = vmatpush1.bf16.msra.mxu0 %v1391_v31  ;;  %705 = vmatpush1.bf16.msra.mxu1 %v1392_v32  ;;  %v1433_v3 = vld [vmem:[#allocation5 + $0x120] ss:$16 sps:$4 sm:$0xff]   ;;  %v1434_v4 = vld [vmem:[#allocation5 + $0x128] ss:$16 sps:$4 sm:$0xff]   ;;  %v1612_v5 = vmov 22   ;;  %v1613_v16 = vmov 0.0  }
  0x48   :  { %665 = vmatprep.subr.bf16.mxu0 %v1393_v35  ;;  %706 = vmatprep.subr.bf16.mxu1 %v1395_v36  ;;  %v1435_v6 = vld [vmem:[#allocation5 + $0x104] ss:$16 sps:$4 sm:$0xff]   ;;  %v1437_v7 = vld [vmem:[#allocation5 + $0x10c] ss:$16 sps:$4 sm:$0xff]   ;;  %v1439_v8 = vld [vmem:[#allocation5 + $0x100] ss:$16 sps:$4 sm:$0xff]  }
  0x49   :  { %s1614_s2 = smov [#allocation10]  }
  0x4a   :  { %1351 = vset.pattern.permute.xlu1 %v1597_v9  ;;  %1355 = vset.pattern.permute.xlu0 %v1598_v10  ;;  %v1440_v9 = vld [vmem:[#allocation5 + $0x108] ss:$16 sps:$4 sm:$0xff]   ;;  %s1123_s3 = sshll.u32 %s1614_s2, 4  ;;  %s1124_s3 = int_to_ptr.vmem [resolvable:$true] %s1123_s3 }
  0x4b   :  { %156 = vperm.xlu1 %1351, %v1653_v2   ;;  %200 = vperm.xlu0 %1355, %v1653_v2   ;;  %v1441_v10 = vld [vmem:[#allocation7 + $0x78] sm:$0xff]   ;;  %s1553_s12 = scalar_lea.vmem %s1124_s3, 16  ;;  %s1557_s13 = scalar_lea.vmem %s1124_s3, 32 }
  0x4c   :  { %666 = vmatpush1.bf16.msra.mxu0 %v1397_v37  ;;  %707 = vmatpush1.bf16.msra.mxu1 %v1398_v38  ;;  %p1554_p6 = scmp.ne.s32.totalorder %s1124_s3, %s1553_s12  ;;  %p1558_p7 = scmp.lt.s32.totalorder %s1124_s3, %s1124_s3 }
  0x4d   :  { %667 = vmatprep.subr.bf16.mxu0 %v1399_v40  ;;  %708 = vmatprep.subr.bf16.mxu1 %v1401_v41  ;;  %p1559_p8 = scmp.lt.s32.totalorder %s1557_s13, %s1553_s12 }
  0x4f   :  { %1353 = vset.pattern.permute.xlu1 %v1599_v11  ;;  %1358 = vset.pattern.permute.xlu0 %v1600_v12  ;;  %v1442_v11 = vld [vmem:[#allocation7 + $0xf8] sm:$0xff]   ;;  %v75_v12 = vlaneseq  ;;  %p1560_p9 = por %p1559_p8, %p1558_p7 }
  0x50   :  { %178 = vperm.xlu1 %1353, %v1653_v2   ;;  %233 = vperm.xlu0 %1358, %v1653_v2  }
  0x51   :  { %668 = vmatpush1.bf16.msra.mxu0 %v1403_v42  ;;  %709 = vmatpush1.bf16.msra.mxu1 %v1404_v43  ;;  %v1681_v13 = vand.u32 127, %v75_v12  ;;  %p1561_p10 = pnand %p1560_p9, %p1554_p6 }
  0x52   :  { %669 = vmatprep.subr.bf16.mxu0 %v1405_v45  ;;  %710 = vmatprep.subr.bf16.mxu1 %v1407_v46 }
  0x53   :  { %v1684_v14 = vadd.s32 128, %v1681_v13 }
  0x54   :  { %1354 = vset.pattern.permute.xlu1 %v1601_v17  ;;  %1361 = vset.pattern.permute.xlu0 %v1602_v18 }
  0x55   :  { %189 = vperm.xlu1 %1354, %v1653_v2   ;;  %266 = vperm.xlu0 %1361, %v1653_v2  }
  0x56   :  { %670 = vmatpush1.bf16.msra.mxu0 %v1409_v47  ;;  %711 = vmatpush1.bf16.msra.mxu1 %v1410_v48 }
  0x57   :  { %671 = vmatprep.subr.bf16.mxu0 %v1411_v49  ;;  %712 = vmatprep.subr.bf16.mxu1 %v1413_v50 }
  0x59   :  { %1356 = vset.pattern.permute.xlu1 %v1603_v25  ;;  %1364 = vset.pattern.permute.xlu0 %v1604_v26 }
  0x5a   :  { %211 = vperm.xlu1 %1356, %v1653_v2   ;;  %299 = vperm.xlu0 %1364, %v1653_v2  }
  0x5b   :  { %672 = vmatpush1.bf16.msra.mxu0 %v1415_v52  ;;  %713 = vmatpush1.bf16.msra.mxu1 %v1416_v53 }
  0x5c   :  { %681 = vmatprep.subr.bf16.mxu0 %v1417_v54  ;;  %722 = vmatprep.subr.bf16.mxu1 %v1419_v55 }
  0x5e   :  { %1357 = vset.pattern.permute.xlu1 %v1605_v33  ;;  %1367 = vset.pattern.permute.xlu0 %v1606_v34 }
  0x5f   :  { %222 = vperm.xlu1 %1357, %v1653_v2   ;;  %332 = vperm.xlu0 %1367, %v1653_v2  }
  0x60   :  { %682 = vmatpush2.bf16.msra.mxu0 %v1421_v56  ;;  %723 = vmatpush2.bf16.msra.mxu1 %v1422_v58 }
  0x61   :  { %683 = vmatprep.subr.bf16.mxu0 %v1423_v59  ;;  %724 = vmatprep.subr.bf16.mxu1 %v1425_v60 }
  0x63   :  { %1359 = vset.pattern.permute.xlu1 %v1607_v39  ;;  %1368 = vset.pattern.permute.xlu0 %v1590_v1  ;;  %v1431_v1 = vld [vmem:[#allocation5 + $0x12c] ss:$16 sps:$4 sm:$0xff]  }
  0x64   :  { %244 = vperm.xlu1 %1359, %v1653_v2   ;;  %684 = vmatpush2.bf16.msra.mxu0 %v1427_v61 }
  0x65   :  { %725 = vmatpush2.bf16.msra.mxu1 %v1428_v62  ;;  %685 = vmatprep.subr.bf16.mxu0 %v1429_v0 }
  0x66   :  { %726 = vmatprep.subr.bf16.mxu1 %v1431_v1 }
  0x68   :  { %1360 = vset.pattern.permute.xlu1 %v1608_v44  ;;  %686 = vmatpush2.bf16.msra.mxu0 %v1433_v3 }
  0x69   :  { %255 = vperm.xlu1 %1360, %v1653_v2   ;;  %727 = vmatpush2.bf16.msra.mxu1 %v1434_v4 }
  0x6a   :  { %687 = vmatprep.subr.bf16.mxu0 %v1435_v6  ;;  %728 = vmatprep.subr.bf16.mxu1 %v1437_v7 }
  0x6c   :  { %688 = vmatpush2.bf16.msra.mxu0 %v1439_v8 }
  0x6d   :  { %1362 = vset.pattern.permute.xlu1 %v1609_v51  ;;  %729 = vmatpush2.bf16.msra.mxu1 %v1440_v9 }
  0x6e   :  { %277 = vperm.xlu1 %1362, %v1653_v2   ;;  %1266 = vmatprep.subr.bf16.mxu0 %v1441_v10 }
  0x6f   :  { %1288 = vmatprep.subr.bf16.mxu1 %v1442_v11 }
  0x72   :  { %1363 = vset.pattern.permute.xlu1 %v1610_v57 }
  0x73   :  { %288 = vperm.xlu1 %1363, %v1653_v2  }
  0x77   :  { %1365 = vset.pattern.permute.xlu1 %v1611_v63 }
  0x78   :  { %310 = vperm.xlu1 %1365, %v1653_v2  }
  0x7c   :  { %1366 = vset.pattern.permute.xlu1 %v1612_v5 }
  0x7d   :  { %321 = vperm.xlu1 %1366, %v1653_v2  }
  0xb2   :  { %v102_v2 = vpop.permute.xlu1 %101  ;;  %v80_v15 = vpop.permute.xlu0 %79 }
  0xb3   :  { %vm81_vm0 = vcmp.eq.s32.totalorder %v80_v15, %v1681_v13  ;;  %vm82_vm1 = vcmp.eq.s32.totalorder %v80_v15, %v1684_v14  ;;  %vm103_vm2 = vcmp.eq.s32.totalorder %v102_v2, %v1681_v13  ;;  %vm104_vm3 = vcmp.eq.s32.totalorder %v102_v2, %v1684_v14 }
  0xb4   :  { %v1134_v17 = vsel %vm81_vm0, 1.0, %v1613_v16  ;;  %v1135_v18 = vsel %vm82_vm1, 1.0, %v1613_v16  ;;  %v1138_v25 = vsel %vm103_vm2, 1.0, %v1613_v16  ;;  %v1139_v26 = vsel %vm104_vm3, 1.0, %v1613_v16 }
  0xb7   :  { %v113_v19 = vpop.permute.xlu1 %112  ;;  %v91_v20 = vpop.permute.xlu0 %90 }
  0xb8   :  { %vm92_vm4 = vcmp.eq.s32.totalorder %v91_v20, %v1681_v13  ;;  %vm93_vm5 = vcmp.eq.s32.totalorder %v91_v20, %v1684_v14  ;;  %vm114_vm6 = vcmp.eq.s32.totalorder %v113_v19, %v1681_v13  ;;  %vm115_vm7 = vcmp.eq.s32.totalorder %v113_v19, %v1684_v14 }
  0xb9   :  { %v1136_v21 = vsel %vm92_vm4, 1.0, %v1613_v16  ;;  %v1137_v22 = vsel %vm93_vm5, 1.0, %v1613_v16  ;;  %v1140_v27 = vsel %vm114_vm6, 1.0, %v1613_v16  ;;  %v1141_v28 = vsel %vm115_vm7, 1.0, %v1613_v16 }
  0xba   :  { %v98_v23 = vadd.f32 %v1136_v21, %v1134_v17  ;;  %v99_v24 = vadd.f32 %v1137_v22, %v1135_v18 }
  0xbc   :  { %v109_v29 = vadd.f32 %v1138_v25, %v98_v23  ;;  %v110_v30 = vadd.f32 %v1139_v26, %v99_v24  ;;  %v124_v31 = vpop.permute.xlu1 %123  ;;  %v135_v32 = vpop.permute.xlu0 %134 }
  0xbd   :  { %vm125_vm8 = vcmp.eq.s32.totalorder %v124_v31, %v1681_v13  ;;  %vm126_vm9 = vcmp.eq.s32.totalorder %v124_v31, %v1684_v14  ;;  %vm136_vm10 = vcmp.eq.s32.totalorder %v135_v32, %v1681_v13  ;;  %vm137_vm11 = vcmp.eq.s32.totalorder %v135_v32, %v1684_v14 }
  0xbe   :  { %v120_v33 = vadd.f32 %v1140_v27, %v109_v29  ;;  %v121_v34 = vadd.f32 %v1141_v28, %v110_v30  ;;  %v1142_v35 = vsel %vm125_vm8, 1.0, %v1613_v16  ;;  %v1143_v36 = vsel %vm126_vm9, 1.0, %v1613_v16 }
  0xbf   :  { %v1144_v39 = vsel %vm136_vm10, 1.0, %v1613_v16  ;;  %v1145_v40 = vsel %vm137_vm11, 1.0, %v1613_v16 }
  0xc0   :  { %v131_v37 = vadd.f32 %v1142_v35, %v120_v33  ;;  %v132_v38 = vadd.f32 %v1143_v36, %v121_v34 }
  0xc1   :  { %v146_v41 = vpop.permute.xlu1 %145  ;;  %v168_v44 = vpop.permute.xlu0 %167 }
  0xc2   :  { %vm147_vm12 = vcmp.eq.s32.totalorder %v146_v41, %v1681_v13  ;;  %vm148_vm13 = vcmp.eq.s32.totalorder %v146_v41, %v1684_v14  ;;  %v142_v42 = vadd.f32 %v1144_v39, %v131_v37  ;;  %v143_v43 = vadd.f32 %v1145_v40, %v132_v38 }
  0xc3   :  { %v1146_v45 = vsel %vm147_vm12, 1.0, %v1613_v16  ;;  %v1147_v46 = vsel %vm148_vm13, 1.0, %v1613_v16  ;;  %vm169_vm14 = vcmp.eq.s32.totalorder %v168_v44, %v1681_v13  ;;  %vm170_vm15 = vcmp.eq.s32.totalorder %v168_v44, %v1684_v14 }
  0xc4   :  { %v153_v48 = vadd.f32 %v1146_v45, %v142_v42  ;;  %v154_v49 = vadd.f32 %v1147_v46, %v143_v43  ;;  %v1150_v54 = vsel %vm169_vm14, 1.0, %v1613_v16  ;;  %v1151_v55 = vsel %vm170_vm15, 1.0, %v1613_v16 }
  0xc6   :  { %v157_v47 = vpop.permute.xlu1 %156  ;;  %v201_v59 = vpop.permute.xlu0 %200 }
  0xc7   :  { %vm158_vm0 = vcmp.eq.s32.totalorder %v157_v47, %v1681_v13  ;;  %vm159_vm1 = vcmp.eq.s32.totalorder %v157_v47, %v1684_v14  ;;  %vm202_vm4 = vcmp.eq.s32.totalorder %v201_v59, %v1681_v13  ;;  %vm203_vm5 = vcmp.eq.s32.totalorder %v201_v59, %v1684_v14 }
  0xc8   :  { %v1148_v50 = vsel %vm158_vm0, 1.0, %v1613_v16  ;;  %v1149_v51 = vsel %vm159_vm1, 1.0, %v1613_v16  ;;  %v1156_v6 = vsel %vm202_vm4, 1.0, %v1613_v16  ;;  %v1157_v7 = vsel %vm203_vm5, 1.0, %v1613_v16 }
  0xc9   :  { %v164_v52 = vadd.f32 %v1148_v50, %v153_v48  ;;  %v165_v53 = vadd.f32 %v1149_v51, %v154_v49 }
  0xcb   :  { %v179_v56 = vpop.permute.xlu1 %178  ;;  %v175_v57 = vadd.f32 %v1150_v54, %v164_v52  ;;  %v176_v58 = vadd.f32 %v1151_v55, %v165_v53  ;;  %v234_v11 = vpop.permute.xlu0 %233 }
  0xcc   :  { %vm180_vm2 = vcmp.eq.s32.totalorder %v179_v56, %v1681_v13  ;;  %vm181_vm3 = vcmp.eq.s32.totalorder %v179_v56, %v1684_v14  ;;  %vm235_vm10 = vcmp.eq.s32.totalorder %v234_v11, %v1681_v13  ;;  %vm236_vm11 = vcmp.eq.s32.totalorder %v234_v11, %v1684_v14 }
  0xcd   :  { %v1152_v60 = vsel %vm180_vm2, 1.0, %v1613_v16  ;;  %v1153_v61 = vsel %vm181_vm3, 1.0, %v1613_v16  ;;  %v1162_v24 = vsel %vm235_vm10, 1.0, %v1613_v16  ;;  %v1163_v25 = vsel %vm236_vm11, 1.0, %v1613_v16 }
  0xce   :  { %v186_v63 = vadd.f32 %v1152_v60, %v175_v57  ;;  %v187_v0 = vadd.f32 %v1153_v61, %v176_v58 }
  0xd0   :  { %v190_v62 = vpop.permute.xlu1 %189  ;;  %v267_v29 = vpop.permute.xlu0 %266 }
  0xd1   :  { %vm191_vm6 = vcmp.eq.s32.totalorder %v190_v62, %v1681_v13  ;;  %vm192_vm7 = vcmp.eq.s32.totalorder %v190_v62, %v1684_v14  ;;  %vm268_vm0 = vcmp.eq.s32.totalorder %v267_v29, %v1681_v13  ;;  %vm269_vm1 = vcmp.eq.s32.totalorder %v267_v29, %v1684_v14  ;;  %v1459_v29 = vld [vmem:[#allocation7 + $0x18] sm:$0xff]  }
  0xd2   :  { %v1154_v1 = vsel %vm191_vm6, 1.0, %v1613_v16  ;;  %v1155_v3 = vsel %vm192_vm7, 1.0, %v1613_v16  ;;  %v1168_v39 = vsel %vm268_vm0, 1.0, %v1613_v16  ;;  %v1169_v40 = vsel %vm269_vm1, 1.0, %v1613_v16 }
  0xd3   :  { %v197_v4 = vadd.f32 %v1154_v1, %v186_v63  ;;  %v198_v5 = vadd.f32 %v1155_v3, %v187_v0  ;;  %vm653_vm0 = vcmask 523264   ;;  %vm1115_vm1 = vcmask 57344  }
  0xd5   :  { %v212_v8 = vpop.permute.xlu1 %211  ;;  %v208_v9 = vadd.f32 %v1156_v6, %v197_v4  ;;  %v209_v10 = vadd.f32 %v1157_v7, %v198_v5  ;;  %v300_v44 = vpop.permute.xlu0 %299 }
  0xd6   :  { %vm213_vm8 = vcmp.eq.s32.totalorder %v212_v8, %v1681_v13  ;;  %vm214_vm9 = vcmp.eq.s32.totalorder %v212_v8, %v1684_v14  ;;  %vm301_vm6 = vcmp.eq.s32.totalorder %v300_v44, %v1681_v13  ;;  %vm302_vm7 = vcmp.eq.s32.totalorder %v300_v44, %v1684_v14 }
  0xd7   :  { %v1158_v2 = vsel %vm213_vm8, 1.0, %v1613_v16  ;;  %v1159_v15 = vsel %vm214_vm9, 1.0, %v1613_v16  ;;  %v1174_v54 = vsel %vm301_vm6, 1.0, %v1613_v16  ;;  %v1175_v55 = vsel %vm302_vm7, 1.0, %v1613_v16 }
  0xd8   :  { %v219_v18 = vadd.f32 %v1158_v2, %v208_v9  ;;  %v220_v19 = vadd.f32 %v1159_v15, %v209_v10  ;;  %v1443_v2 = vld [vmem:[#allocation7 + $0x38] sm:$0xff]  }
  0xd9   :  { %v1444_v15 = vld [vmem:[#allocation7 + $0xb8] sm:$0xff]  }
  0xda   :  { %v223_v17 = vpop.permute.xlu1 %222  ;;  %v333_v57 = vpop.permute.xlu0 %332 }
  0xdb   :  { %vm224_vm12 = vcmp.eq.s32.totalorder %v223_v17, %v1681_v13  ;;  %vm225_vm13 = vcmp.eq.s32.totalorder %v223_v17, %v1684_v14  ;;  %v1445_v17 = vld [vmem:[#allocation7 + $0x70] sm:$0xff]  }
  0xdc   :  { %v1160_v20 = vsel %vm224_vm12, 1.0, %v1613_v16  ;;  %v1161_v21 = vsel %vm225_vm13, 1.0, %v1613_v16  ;;  %vm334_vm12 = vcmp.eq.s32.totalorder %v333_v57, %v1681_v13  ;;  %vm335_vm13 = vcmp.eq.s32.totalorder %v333_v57, %v1684_v14 }
  0xdd   :  { %v230_v22 = vadd.f32 %v1160_v20, %v219_v18  ;;  %v231_v23 = vadd.f32 %v1161_v21, %v220_v19  ;;  %v1180_v4 = vsel %vm334_vm12, 1.0, %v1613_v16  ;;  %v1181_v5 = vsel %vm335_vm13, 1.0, %v1613_v16  ;;  %v1446_v18 = vld [vmem:[#allocation7 + $0xf0] sm:$0xff]   ;;  %v1450_v20 = vld [vmem:[#allocation7 + $0xe8] sm:$0xff]  }
  0xde   :  { %v1448_v19 = vld [vmem:[#allocation7 + $0xb0] sm:$0xff]   ;;  %v1451_v21 = vld [vmem:[#allocation7 + $0x28] sm:$0xff]  }
  0xdf   :  { %v245_v26 = vpop.permute.xlu1 %244  ;;  %v241_v27 = vadd.f32 %v1162_v24, %v230_v22  ;;  %v242_v28 = vadd.f32 %v1163_v25, %v231_v23  ;;  %v1452_v22 = vld [vmem:[#allocation7 + $0xa8] sm:$0xff]   ;;  %v1453_v23 = vld [vmem:[#allocation7 + $0x60] sm:$0xff]  }
  0xe0   :  { %vm246_vm14 = vcmp.eq.s32.totalorder %v245_v26, %v1681_v13  ;;  %vm247_vm15 = vcmp.eq.s32.totalorder %v245_v26, %v1684_v14  ;;  %v1454_v24 = vld [vmem:[#allocation7 + $0xe0] sm:$0xff]  }
  0xe1   :  { %v1164_v30 = vsel %vm246_vm14, 1.0, %v1613_v16  ;;  %v1165_v31 = vsel %vm247_vm15, 1.0, %v1613_v16  ;;  %v1455_v25 = vld [vmem:[#allocation7 + $0x20] sm:$0xff]  }
  0xe2   :  { %v252_v33 = vadd.f32 %v1164_v30, %v241_v27  ;;  %v253_v34 = vadd.f32 %v1165_v31, %v242_v28  ;;  %v1456_v26 = vld [vmem:[#allocation7 + $0xa0] sm:$0xff]   ;;  %v1457_v27 = vld [vmem:[#allocation7 + $0x58] sm:$0xff]   ;;  %v1461_v31 = vld [vmem:[#allocation7 + $0x50] sm:$0xff]  }
  0xe3   :  { %v1458_v28 = vld [vmem:[#allocation7 + $0xd8] sm:$0xff]  }
  0xe4   :  { %v256_v32 = vpop.permute.xlu1 %255  ;;  %v1460_v30 = vld [vmem:[#allocation7 + $0x98] sm:$0xff]  }
  0xe5   :  { %vm257_vm2 = vcmp.eq.s32.totalorder %v256_v32, %v1681_v13  ;;  %vm258_vm3 = vcmp.eq.s32.totalorder %v256_v32, %v1684_v14  ;;  %v1462_v32 = vld [vmem:[#allocation7 + $0xd0] sm:$0xff]  }
  0xe6   :  { %v1166_v35 = vsel %vm257_vm2, 1.0, %v1613_v16  ;;  %v1167_v36 = vsel %vm258_vm3, 1.0, %v1613_v16 }
  0xe7   :  { %v263_v37 = vadd.f32 %v1166_v35, %v252_v33  ;;  %v264_v38 = vadd.f32 %v1167_v36, %v253_v34  ;;  %v1463_v33 = vld [vmem:[#allocation7 + $0x10] sm:$0xff]   ;;  %v1465_v35 = vld [vmem:[#allocation7 + $0x48] sm:$0xff]  }
  0xe8   :  { %v1464_v34 = vld [vmem:[#allocation7 + $0x90] sm:$0xff]   ;;  %v1466_v36 = vld [vmem:[#allocation7 + $0xc8] sm:$0xff]  }
  0xe9   :  { %v278_v41 = vpop.permute.xlu1 %277  ;;  %v274_v42 = vadd.f32 %v1168_v39, %v263_v37  ;;  %v275_v43 = vadd.f32 %v1169_v40, %v264_v38  ;;  %v1467_v37 = vld [vmem:[#allocation7 + $0x8] sm:$0xff]   ;;  %v1469_v39 = vld [vmem:[#allocation7 + $0x40] sm:$0xff]  }
  0xea   :  { %vm279_vm4 = vcmp.eq.s32.totalorder %v278_v41, %v1681_v13  ;;  %vm280_vm5 = vcmp.eq.s32.totalorder %v278_v41, %v1684_v14  ;;  %v1468_v38 = vld [vmem:[#allocation7 + $0x88] sm:$0xff]   ;;  %v1470_v40 = vld [vmem:[#allocation7 + $0xc0] sm:$0xff]  }
  0xeb   :  { %v1170_v45 = vsel %vm279_vm4, 1.0, %v1613_v16  ;;  %v1171_v46 = vsel %vm280_vm5, 1.0, %v1613_v16  ;;  %v1471_v41 = vld [vmem:[#allocation7] sm:$0xff]  }
  0xec   :  { %v285_v48 = vadd.f32 %v1170_v45, %v274_v42  ;;  %v286_v49 = vadd.f32 %v1171_v46, %v275_v43  ;;  %v1472_v42 = vld [vmem:[#allocation7 + $0x80] sm:$0xff]   ;;  %v394_v43 = vshrl.u32 %v75_v12, 7 }
  0xed   :  { %v70_v46 = vld [vmem:[#allocation8] sm:$0xf] }
  0xee   :  { %v289_v47 = vpop.permute.xlu1 %288  ;;  %v395_v44 = vsub.s32 0, %v394_v43  ;;  %v403_v45 = vsub.s32 2, %v394_v43 }
  0xef   :  { %vm290_vm8 = vcmp.eq.s32.totalorder %v289_v47, %v1681_v13  ;;  %vm291_vm9 = vcmp.eq.s32.totalorder %v289_v47, %v1684_v14  ;;  %v399_v47 = vsub.s32 1, %v394_v43 }
  0xf0   :  { %v1172_v50 = vsel %vm290_vm8, 1.0, %v1613_v16  ;;  %v1173_v51 = vsel %vm291_vm9, 1.0, %v1613_v16 }
  0xf1   :  { %v296_v52 = vadd.f32 %v1172_v50, %v285_v48  ;;  %v297_v53 = vadd.f32 %v1173_v51, %v286_v49  ;;  %v407_v48 = vsub.s32 3, %v394_v43  ;;  %v396_v49 = vrot.slane %v70_v46, %v395_v44 }
  0xf2   :  { %v404_v50 = vrot.slane %v70_v46, %v403_v45  ;;  %v400_v51 = vrot.slane %v70_v46, %v399_v47 }
  0xf3   :  { %v311_v56 = vpop.permute.xlu1 %310  ;;  %v307_v58 = vadd.f32 %v1174_v54, %v296_v52  ;;  %v308_v59 = vadd.f32 %v1175_v55, %v297_v53  ;;  %v408_v52 = vrot.slane %v70_v46, %v407_v48 }
  0xf4   :  { %vm312_vm10 = vcmp.eq.s32.totalorder %v311_v56, %v1681_v13  ;;  %vm313_vm11 = vcmp.eq.s32.totalorder %v311_v56, %v1684_v14 }
  0xf5   :  { %v1176_v60 = vsel %vm312_vm10, 1.0, %v1613_v16  ;;  %v1177_v61 = vsel %vm313_vm11, 1.0, %v1613_v16 }
  0xf6   :  { %v318_v63 = vadd.f32 %v1176_v60, %v307_v58  ;;  %v319_v0 = vadd.f32 %v1177_v61, %v308_v59 }
  0xf8   :  { %v322_v62 = vpop.permute.xlu1 %321 }
  0xf9   :  { %vm323_vm14 = vcmp.eq.s32.totalorder %v322_v62, %v1681_v13  ;;  %vm324_vm15 = vcmp.eq.s32.totalorder %v322_v62, %v1684_v14  ;;  %v1447_v14 = vld [vmem:[#allocation7 + $0x30] sm:$0xff]  }
  0xfa   :  { %v1178_v1 = vsel %vm323_vm14, 1.0, %v1613_v16  ;;  %v1179_v3 = vsel %vm324_vm15, 1.0, %v1613_v16  ;;  %v1449_v16 = vld [vmem:[#allocation7 + $0x68] sm:$0xff]  }
  0xfb   :  { %v329_v6 = vadd.f32 %v1178_v1, %v318_v63  ;;  %v330_v7 = vadd.f32 %v1179_v3, %v319_v0 }
  0xfd   :  { %v340_v8 = vadd.f32 %v1180_v4, %v329_v6  ;;  %v341_v9 = vadd.f32 %v1181_v5, %v330_v7 }
  0xff   :  { %v343_v10 = vpack.c.bf16 %v341_v9, %v341_v9  ;;  %v342_v11 = vpack.c.bf16 %v340_v8, %v340_v8  ;;  %v73_v9 = vld [vmem:[#allocation8 + $0x6] sm:$0x1] }
 0x100   :  { %1101 = vperm.xlu0 %1368, %v73_v9  }
 0x101   :  { %1230 = vmatprep.mubr.msk.bf16.mxu0 %vm653_vm0, %v343_v10  ;;  %1231 = vmatprep.mubr.msk.bf16.mxu1 %vm653_vm0, %v343_v10 }
 0x102   :  { %690 = vmatmul.mubr.bf16.vlgmr.msra.gmra.mxu0 %v342_v11  ;;  %731 = vmatmul.mubr.bf16.vlgmr.msra.gmra.mxu1 %v342_v11 }
 0x103   :  { %1267 = vmatpush3.bf16.msra.mxu0 %v1443_v2  ;;  %1289 = vmatpush3.bf16.msra.mxu1 %v1444_v15  ;;  %v1232_v2 = vld [vmem:[#allocation8 + $0x4] ss:$0 sm:$0xff] }
 0x104   :  { %1268 = vmatprep.subr.bf16.mxu0 %v1445_v17  ;;  %1290 = vmatprep.subr.bf16.mxu1 %v1446_v18 }
 0x107   :  { %1269 = vmatpush3.bf16.msra.mxu0 %v1447_v14  ;;  %1291 = vmatpush3.bf16.msra.mxu1 %v1448_v19 }
 0x108   :  { %1270 = vmatprep.subr.bf16.mxu0 %v1449_v16  ;;  %1292 = vmatprep.subr.bf16.mxu1 %v1450_v20 }
 0x10b   :  { %1271 = vmatpush3.bf16.msra.mxu0 %v1451_v21  ;;  %1293 = vmatpush3.bf16.msra.mxu1 %v1452_v22 }
 0x10c   :  { %1272 = vmatprep.subr.bf16.mxu0 %v1453_v23  ;;  %1294 = vmatprep.subr.bf16.mxu1 %v1454_v24  ;;  %v1265_v24 = vld [vmem:[#allocation8 + $0x5] ss:$0 sm:$0xff] }
 0x10f   :  { %1273 = vmatpush3.bf16.msra.mxu0 %v1455_v25  ;;  %1295 = vmatpush3.bf16.msra.mxu1 %v1456_v26 }
 0x110   :  { %1274 = vmatprep.subr.bf16.mxu0 %v1457_v27  ;;  %1296 = vmatprep.subr.bf16.mxu1 %v1458_v28 }
 0x113   :  { %1275 = vmatpush3.bf16.msra.mxu0 %v1459_v29  ;;  %1297 = vmatpush3.bf16.msra.mxu1 %v1460_v30  ;;  %v1112_v29 = vsub.s32 %v1681_v13, %v394_v43 }
 0x114   :  { %1276 = vmatprep.subr.bf16.mxu0 %v1461_v31  ;;  %1298 = vmatprep.subr.bf16.mxu1 %v1462_v32 }
 0x117   :  { %1277 = vmatpush3.bf16.msra.mxu0 %v1463_v33  ;;  %1299 = vmatpush3.bf16.msra.mxu1 %v1464_v34 }
 0x118   :  { %1278 = vmatprep.subr.bf16.mxu0 %v1465_v35  ;;  %1300 = vmatprep.subr.bf16.mxu1 %v1466_v36 }
 0x11b   :  { %1279 = vmatpush3.bf16.msra.mxu0 %v1467_v37  ;;  %1301 = vmatpush3.bf16.msra.mxu1 %v1468_v38 }
 0x11c   :  { %1280 = vmatprep.subr.bf16.mxu0 %v1469_v39  ;;  %1302 = vmatprep.subr.bf16.mxu1 %v1470_v40 }
 0x11f   :  { %1281 = vmatpush3.bf16.msra.mxu0 %v1471_v41  ;;  %1303 = vmatpush3.bf16.msra.mxu1 %v1472_v42 }
 0x17b   :  { %v1102_v27 = vpop.permute.xlu0 %1101 }
 0x17c   :  { %v1107_v28 = vrot.slane %v1102_v27, %v395_v44 }
 0x1c2   :  { %v691_v53 = vpop.f32.mrf.mxu0  ;;  %v732_v54 = vpop.f32.mrf.mxu1 }
 0x1c3   :  { %v692_v55 = vadd.f32 %v691_v53, %v396_v49  ;;  %v733_v56 = vadd.f32 %v732_v54, %v404_v50 }
 0x1c4   :  { %v693_v57 = vpop.f32.mrf.mxu0  ;;  %v734_v58 = vpop.f32.mrf.mxu1 }
 0x1c5   :  { %v694_v59 = vadd.f32 %v693_v57, %v400_v51  ;;  %v735_v60 = vadd.f32 %v734_v58, %v408_v52  ;;  %v739_v61 = vmax.f32 %v692_v55, 0.0  ;;  %v741_v62 = vmax.f32 %v733_v56, 0.0 }
 0x1c6   :  { %v695_v12 = vpop.f32.mrf.mxu0  ;;  %v736_v63 = vpop.f32.mrf.mxu1 }
 0x1c7   :  { %v740_v0 = vmax.f32 %v694_v59, 0.0  ;;  %v742_v1 = vmax.f32 %v735_v60, 0.0  ;;  %v743_v7 = vpack.c.bf16 %v739_v61, %v739_v61  ;;  %v745_v8 = vpack.c.bf16 %v741_v62, %v741_v62 }
 0x1c8   :  { %v696_v3 = vpop.f32.mrf.mxu0  ;;  %v737_v4 = vpop.f32.mrf.mxu1 }
 0x1c9   :  { %v744_v5 = vpack.c.bf16 %v740_v0, %v740_v0  ;;  %v746_v6 = vpack.c.bf16 %v742_v1, %v742_v1 }
 0x1cb   :  { %1041 = vmatprep.mubr.bf16.mxu0 %v744_v5  ;;  %1081 = vmatprep.mubr.bf16.mxu1 %v746_v6 }
 0x1cc   :  { %1042 = vmatmul.mubr.bf16.vlgmr.msra.gmra.mxu0 %v743_v7  ;;  %1082 = vmatmul.mubr.bf16.vlgmr.msra.gmra.mxu1 %v745_v8 }
 0x28c   :  { %v1282_v10 = vpop.f32.mrf.mxu0  ;;  %v1304_v11 = vpop.f32.mrf.mxu1 }
 0x28e   :  { %v1283_v15 = vpop.f32.mrf.mxu0  ;;  %v1305_v17 = vpop.f32.mrf.mxu1 }
 0x28f   :  { %v1284_v18 = vadd.f32 %v1283_v15, %v1282_v10  ;;  %v1306_v20 = vadd.f32 %v1305_v17, %v1304_v11 }
 0x290   :  { %v1285_v14 = vpop.f32.mrf.mxu0  ;;  %v1307_v19 = vpop.f32.mrf.mxu1 }
 0x291   :  { %v1044_v16 = vadd.f32 %v1284_v18, %v1232_v2 }
 0x292   :  { %v1286_v21 = vpop.f32.mrf.mxu0  ;;  %v1308_v22 = vpop.f32.mrf.mxu1 }
 0x293   :  { %v1084_v23 = vadd.f32 %v1306_v20, %v1044_v16 }
 0x295   :  { %v1089_v25 = vmax.f32 %v1084_v23, 0.0 }
 0x297   :  { %v1096_v26 = vmul.f32 %v1265_v24, %v1089_v25 }
 0x299   :  { %1097 = vadd.xlane.f32.xlu1 %v1096_v26 }
 0x322   :  { %v1098_v30 = vpop.xlane.xlu1 %1097 }
 0x323   :  { %v1108_v31 = vadd.f32 %v1107_v28, %v1098_v30 }
 0x325   :  { %v1113_v32 = vrot.slane %v1108_v31, %v1112_v29 }
 0x327   :  { %1116 = vst.msk [vmem:[#allocation10] sm:$0x1] %vm1115_vm1, %v1113_v32 }
 0x328   :  { %1564 = shalt.err (!%p1561_p10)
}
 0x329   :  { %1126 = dma.vmem_to_hbm [thread:$0]  %s1124_s3, 16, %s1791_s4, [#allocation4]  }
 0x32a   :  { %1579 = dma.done.wait [#allocation4], 16  }
 0x32b   :  { %1580 = vsyncadd [#allocation4], 4294967280 }
 0x32c   :  { %1130 = vsyncpa [#allocation3], 1 }
 0x32d   :  { %1131 = vsyncpa [#allocation6], 1 }
 0x32e   :  { %1132 = vsyncpa [#allocation9], 1 }
 0x32f   :  { %1133 = vsyncpa [#allocation4], 1 }

</bundles_post_ra>
